<compile_context>
chip_gen: v6e
topology: v6e:2x2x1
jax: 0.10.0
libtpu: 0.0.40
codegen_flags: <defaults>
</compile_context>

<pallas_src>
import jax
import jax.numpy as jnp
import numpy as np
from jax.experimental import pallas as pl
from jax.experimental.pallas import tpu as pltpu

# ----------------------- problem sizes (small, consistent with the module) -------
N         = 8     # number of nodes per graph
PCA_DIM   = 4
PI_DIM    = 4
F_ALL     = PCA_DIM + PI_DIM            # 8
HID_DIM   = 32    # node feature dim == MLP hidden dim
NUM_HEADS = 2
NUM_COMBO = 2 * NUM_HEADS               # (head, stream) pairs, output order
OUT_COLS  = NUM_COMBO * HID_DIM         # 128 -> exactly one lane-dense vreg row
NEG_SLOPE = 0.01  # nn.LeakyReLU default negative_slope

assert OUT_COLS == NUM_HEADS * 2 * HID_DIM == 128
assert NUM_COMBO * N == 32

# ---- call-invariant weight-slab layout (row offsets; 128 lanes) ------------------
_W_W1   = 0                       # rows  0:8    block-diag first MLP layer  [8,128]
_W_B1   = F_ALL                   # row   8      cols 0:64   [b1_pca | b1_pimg]
_W_B2   = F_ALL + 1               # row   9      cols 0:4    second-layer bias
_W_W2T  = 16                      # rows 16:80   cols 0:4    pre-transposed W2  [64,4]
_W_SEG  = _W_W2T + 2 * HID_DIM    # rows 80:112  cols 0:4    segment-sum matrix [32,4]
_W_ROWS = _W_SEG + NUM_COMBO * N  # 112 (multiple of 8)
assert _W_ROWS % 8 == 0


# ----------------------------------- kernel --------------------------------------
def edge_attention_kernel(adj_ref, feat_ref, hbd_ref, w_ref, out_ref):
    adj  = adj_ref[...]            # [N, N]        adj[dst, src]
    feat = feat_ref[...]           # [N, F_ALL]    [pca | pimg]
    hbd  = hbd_ref[...]            # [4N, 4*HID]   block-diagonal node features

    w1  = w_ref[_W_W1:_W_W1 + F_ALL, :]                        # [8, 128]
    b1  = w_ref[_W_B1:_W_B1 + 1, 0:2 * HID_DIM]                # [1, 64]
    b2  = w_ref[_W_B2:_W_B2 + 1, 0:NUM_COMBO]                  # [1, 4]
    w2t = w_ref[_W_W2T:_W_W2T + 2 * HID_DIM, 0:NUM_COMBO]      # [64, 4]
    seg = w_ref[_W_SEG:_W_SEG + NUM_COMBO * N, 0:NUM_COMBO]    # [32, 4]

    # -- first MLP layer: both streams & both (src, dst) roles in ONE MXU push ----
    a = jnp.dot(feat, w1, preferred_element_type=jnp.float32)      # [8, 128]
    a_src = a[:, 0:2 * HID_DIM]                                    # [8, 64]
    a_dst = a[:, 2 * HID_DIM:4 * HID_DIM]                          # [8, 64]
    z = jnp.maximum(a_dst[:, None, :] + a_src[None, :, :]
                    + b1.reshape(1, 1, 2 * HID_DIM), 0.0)          # [dst, src, 64]
    z2 = z.reshape(N * N, 2 * HID_DIM)                             # [64, 64]

    # -- second MLP layer for all (head, stream) combos: ONE MXU matmul -----------
    #    (W2 pre-transposed in the slab -> no RHS relayout)
    s_all = jnp.dot(z2, w2t, preferred_element_type=jnp.float32) + b2   # [64, 4]
    s3 = s_all.reshape(N, N, NUM_COMBO)                                 # [dst, src, combo]

    # -- lane-batched masked edge softmax: scores laid out as [dst, combo*8 + src] -
    s2   = jnp.concatenate([s3[:, :, c] for c in range(NUM_COMBO)], axis=1)  # [8, 32]
    adj4 = jnp.concatenate([adj] * NUM_COMBO, axis=1)                        # [8, 32]
    # fused LeakyReLU + non-edge mask
    s2 = jnp.where(adj4 > 0.0, jnp.where(s2 >= 0.0, s2, NEG_SLOPE * s2), -1e30)
    # per-(dst, combo) max over src (4 tiny lane reduces), broadcast back to [8,32]
    m2 = jnp.concatenate(
        [jnp.broadcast_to(jnp.max(s2[:, c * N:(c + 1) * N], axis=1, keepdims=True),
                          (N, N))
         for c in range(NUM_COMBO)], axis=1)                                 # [8, 32]
    p2 = jnp.exp(s2 - m2) * adj4              # unnormalised attention, ONE EUP pass
    # per-dst denominators for all combos with one MXU matmul (segment-sum matrix)
    denom = jnp.dot(p2, seg, preferred_element_type=jnp.float32)            # [8, 4]
    inv = pl.reciprocal(jnp.where(denom > 0.0, denom, 1.0), approx=True)    # [8, 4]
    inv2 = jnp.concatenate(
        [jnp.broadcast_to(inv[:, c:c + 1], (N, N)) for c in range(NUM_COMBO)],
        axis=1)                                                              # [8, 32]
    alpha = p2 * inv2                                                        # [8, 32]

    # -- aggregation for all combos in ONE MXU matmul against block-diag H --------
    #    result is already lane-dense [8, 128]; single unmasked full-width store
    out_ref[...] = jnp.dot(alpha, hbd, preferred_element_type=jnp.float32)


# ------------------------ one-time (call-invariant) weight packing ----------------
def pack_params(params):
    """Pack all MLP parameters into one [112, 128] f32 slab.  Call ONCE per model."""
    w1p, b1p, w2pt, b2p, w1i, b1i, w2it, b2i = [np.asarray(p, np.float32)
                                                for p in params]
    w = np.zeros((_W_ROWS, 128), np.float32)
    # block-diagonal W1: columns = [pca_src | pimg_src | pca_dst | pimg_dst]
    w[0:PCA_DIM,      0:HID_DIM]                 = w1p[:PCA_DIM]
    w[PCA_DIM:F_ALL,  HID_DIM:2 * HID_DIM]       = w1i[:PI_DIM]
    w[0:PCA_DIM,      2 * HID_DIM:3 * HID_DIM]   = w1p[PCA_DIM:]
    w[PCA_DIM:F_ALL,  3 * HID_DIM:4 * HID_DIM]   = w1i[PI_DIM:]
    # first-layer bias: [b1_pca | b1_pimg]
    w[_W_B1, 0:HID_DIM]                = b1p[0]
    w[_W_B1, HID_DIM:2 * HID_DIM]      = b1i[0]
    # second layer, PRE-TRANSPOSED: one column per combo c = head*2 + stream
    for c in range(NUM_COMBO):
        head, stream = c // 2, c % 2          # stream 0 = pca, 1 = pimg
        if stream == 0:
            w[_W_W2T:_W_W2T + HID_DIM, c]                  = w2pt[head]
            w[_W_B2, c]                                    = b2p[0, head]
        else:
            w[_W_W2T + HID_DIM:_W_W2T + 2 * HID_DIM, c]    = w2it[head]
            w[_W_B2, c]                                    = b2i[0, head]
    # segment-sum matrix: seg[c*N + s, c'] = (c == c')
    w[_W_SEG:_W_SEG + NUM_COMBO * N, 0:NUM_COMBO] = np.kron(
        np.eye(NUM_COMBO, dtype=np.float32), np.ones((N, 1), np.float32))
    return jnp.asarray(w)


# ----------------------------------- wrapper -------------------------------------
@jax.jit
def edge_attention(adj, pca, pimg, h, w_packed):
    """adj: [B,N,N], pca: [B,N,PCA_DIM], pimg: [B,N,PI_DIM], h: [B,N,HID_DIM]."""
    B = adj.shape[0]
    feat = jnp.concatenate([pca, pimg], axis=-1)                      # [B, N, 8]
    # block-diagonal H for the fused aggregation matmul (review suggestion)
    eye = jnp.eye(NUM_COMBO, dtype=h.dtype)
    hbd = jnp.einsum('cd,bsf->bcsdf', eye, h).reshape(
        B, NUM_COMBO * N, NUM_COMBO * HID_DIM)                        # [B, 32, 128]

    out_flat = pl.pallas_call(
        edge_attention_kernel,
        out_shape=jax.ShapeDtypeStruct((B, N, OUT_COLS), jnp.float32),
        grid=(B,),
        in_specs=[
            pl.BlockSpec((None, N, N), lambda b: (b, 0, 0)),
            pl.BlockSpec((None, N, F_ALL), lambda b: (b, 0, 0)),
            pl.BlockSpec((None, NUM_COMBO * N, NUM_COMBO * HID_DIM),
                         lambda b: (b, 0, 0)),
            pl.BlockSpec((_W_ROWS, 128), lambda b: (0, 0)),   # resident weights
        ],
        out_specs=pl.BlockSpec((None, N, OUT_COLS), lambda b: (b, 0, 0)),
        compiler_params=pltpu.CompilerParams(
            dimension_semantics=("parallel",)),                # shards B over TCs on v7x
    )(adj, feat, hbd, w_packed)
    # lane layout: col = head*64 + stream*32 + f  ->  (B, N, NUM_HEADS, 2*HID_DIM)
    return out_flat.reshape(B, N, NUM_HEADS, 2 * HID_DIM)


# --------------------------------- reference -------------------------------------
def reference(adj, pca, pimg, h, params):
    """Pure-JAX reference for ONE graph (adj [N,N])."""
    w1p, b1p, w2pt, b2p, w1i, b1i, w2it, b2i = params

    def one(feat, w1, b1, w2t, b2):
        nn_, f = feat.shape
        src = jnp.broadcast_to(feat[None, :, :], (nn_, nn_, f))
        dst = jnp.broadcast_to(feat[:, None, :], (nn_, nn_, f))
        cat = jnp.concatenate([src, dst], axis=-1)            # [dst, src, 2F]
        z = jax.nn.relu(cat @ w1 + b1[0])
        s = z @ w2t.T + b2[0]                                 # [N, N, H]
        s = jnp.where(s >= 0, s, NEG_SLOPE * s)
        mask = (adj > 0)[:, :, None]
        s = jnp.where(mask, s, -1e30)
        m = jnp.max(s, axis=1, keepdims=True)
        p = jnp.exp(s - m) * adj[:, :, None]
        denom = jnp.sum(p, axis=1, keepdims=True)
        alpha = p / jnp.where(denom > 0, denom, 1.0)
        return jnp.einsum('ijh,jd->ihd', alpha, h)

    return jnp.concatenate([one(pca,  w1p, b1p, w2pt, b2p),
                            one(pimg, w1i, b1i, w2it, b2i)], axis=-1)


# ------------------------------------ main ---------------------------------------
if __name__ == "__main__":
    key = jax.random.PRNGKey(0)
    keys = jax.random.split(key, 12)
    B = 4  # batch of independent graphs (amortizes fixed cost; parallel on v7x)

    # graphs: random sparse adjacency (dst, src) + self loops (keeps edge_softmax defined)
    adj = jax.random.bernoulli(keys[0], 0.3, (B, N, N)).astype(jnp.float32)
    adj = jnp.maximum(adj, jnp.broadcast_to(jnp.eye(N, dtype=jnp.float32), (B, N, N)))

    pca  = jax.random.normal(keys[1], (B, N, PCA_DIM), jnp.float32)
    pimg = jax.random.normal(keys[2], (B, N, PI_DIM),  jnp.float32)
    h    = jax.random.normal(keys[3], (B, N, HID_DIM), jnp.float32)

    s = 0.1  # deterministic small-scale init
    w1p  = s * jax.random.normal(keys[4],  (2 * PCA_DIM, HID_DIM),  jnp.float32)
    b1p  = s * jax.random.normal(keys[5],  (1, HID_DIM),            jnp.float32)
    w2pt = s * jax.random.normal(keys[6],  (NUM_HEADS, HID_DIM),    jnp.float32)  # W2^T
    b2p  = s * jax.random.normal(keys[7],  (1, NUM_HEADS),          jnp.float32)
    w1i  = s * jax.random.normal(keys[8],  (2 * PI_DIM, HID_DIM),   jnp.float32)
    b1i  = s * jax.random.normal(keys[9],  (1, HID_DIM),            jnp.float32)
    w2it = s * jax.random.normal(keys[10], (NUM_HEADS, HID_DIM),    jnp.float32)
    b2i  = s * jax.random.normal(keys[11], (1, NUM_HEADS),          jnp.float32)
    params = (w1p, b1p, w2pt, b2p, w1i, b1i, w2it, b2i)

    # one-time, call-invariant weight packing (hoisted out of the per-call path)
    w_packed = pack_params(params)

    out = jax.block_until_ready(edge_attention(adj, pca, pimg, h, w_packed))

    ref = jax.block_until_ready(
        jax.vmap(lambda a, p, q, hh: reference(a, p, q, hh, params))(adj, pca, pimg, h))

    assert out.shape == (B, N, NUM_HEADS, 2 * HID_DIM)
    # pl.reciprocal(approx=True) -> softmax normalization is approximate (within 1e-2)
    assert np.allclose(np.asarray(out), np.asarray(ref), atol=1e-2, rtol=1e-2)

    print("KERNEL_OK")
</pallas_src>

<mosaic_0001>
module attributes {stable_mosaic.version = 11 : i64} {
  func.func @edge_attention_kernel(%arg0: i32, %arg1: memref<1x8x8xf32, #tpu.memory_space<vmem>>, %arg2: memref<1x8x8xf32, #tpu.memory_space<vmem>>, %arg3: memref<1x32x128xf32, #tpu.memory_space<vmem>>, %arg4: memref<112x128xf32, #tpu.memory_space<vmem>>, %arg5: memref<1x8x128xf32, #tpu.memory_space<vmem>>) attributes {dimension_semantics = [#tpu.dimension_semantics<parallel>], iteration_bounds = array<i64: 4>, scalar_prefetch = 0 : i64, scratch_operands = 0 : i64, tpu.core_type = #tpu.core_type<tc>, window_params = [{transform_indices = @transform_0, window_bounds = array<i64: 1, 8, 8>}, {transform_indices = @transform_1, window_bounds = array<i64: 1, 8, 8>}, {transform_indices = @transform_2, window_bounds = array<i64: 1, 32, 128>}, {pipeline_mode = #tpu.pipeline_mode<synchronous>, transform_indices = @transform_3, window_bounds = array<i64: 112, 128>}, {transform_indices = @transform_4, window_bounds = array<i64: 1, 8, 128>}]} {
    %c0 = arith.constant 0 : index
    %c0_0 = arith.constant 0 : index
    %c0_1 = arith.constant 0 : index
    %0 = vector.load %arg1[%c0, %c0_0, %c0_1] : memref<1x8x8xf32, #tpu.memory_space<vmem>>, vector<1x8x8xf32>
    %1 = vector.shape_cast %0 : vector<1x8x8xf32> to vector<8x8xf32>
    %c0_2 = arith.constant 0 : index
    %c0_3 = arith.constant 0 : index
    %c0_4 = arith.constant 0 : index
    %2 = vector.load %arg2[%c0_2, %c0_3, %c0_4] : memref<1x8x8xf32, #tpu.memory_space<vmem>>, vector<1x8x8xf32>
    %3 = vector.shape_cast %2 : vector<1x8x8xf32> to vector<8x8xf32>
    %c0_5 = arith.constant 0 : index
    %c0_6 = arith.constant 0 : index
    %c0_7 = arith.constant 0 : index
    %4 = vector.load %arg3[%c0_5, %c0_6, %c0_7] : memref<1x32x128xf32, #tpu.memory_space<vmem>>, vector<1x32x128xf32>
    %5 = vector.shape_cast %4 : vector<1x32x128xf32> to vector<32x128xf32>
    %c0_8 = arith.constant 0 : index
    %c0_9 = arith.constant 0 : index
    %6 = vector.load %arg4[%c0_8, %c0_9] : memref<112x128xf32, #tpu.memory_space<vmem>>, vector<8x128xf32>
    %c8 = arith.constant 8 : index
    %c0_10 = arith.constant 0 : index
    %7 = vector.load %arg4[%c8, %c0_10] : memref<112x128xf32, #tpu.memory_space<vmem>>, vector<1x64xf32>
    %c9 = arith.constant 9 : index
    %c0_11 = arith.constant 0 : index
    %8 = vector.load %arg4[%c9, %c0_11] : memref<112x128xf32, #tpu.memory_space<vmem>>, vector<1x4xf32>
    %c16 = arith.constant 16 : index
    %c0_12 = arith.constant 0 : index
    %9 = vector.load %arg4[%c16, %c0_12] : memref<112x128xf32, #tpu.memory_space<vmem>>, vector<64x4xf32>
    %c80 = arith.constant 80 : index
    %c0_13 = arith.constant 0 : index
    %10 = vector.load %arg4[%c80, %c0_13] : memref<112x128xf32, #tpu.memory_space<vmem>>, vector<32x4xf32>
    %cst = arith.constant dense<0.000000e+00> : vector<8x128xf32>
    %11 = tpu.matmul %3, %6, %cst {dimension_numbers = #tpu.dot_dimension_numbers<[1], [0], [0], [1], [0, 0, 1, 1], [], []>} : vector<8x8xf32>, vector<8x128xf32>, vector<8x128xf32> -> vector<8x128xf32>
    %12 = vector.extract_strided_slice %11 {offsets = [0, 0], sizes = [8, 64], strides = [1, 1]} : vector<8x128xf32> to vector<8x64xf32>
    %13 = vector.extract_strided_slice %11 {offsets = [0, 64], sizes = [8, 64], strides = [1, 1]} : vector<8x128xf32> to vector<8x64xf32>
    %14 = vector.shape_cast %13 : vector<8x64xf32> to vector<8x1x64xf32>
    %15 = vector.shape_cast %12 : vector<8x64xf32> to vector<1x8x64xf32>
    %16 = vector.broadcast %14 : vector<8x1x64xf32> to vector<8x8x64xf32>
    %17 = vector.broadcast %15 : vector<1x8x64xf32> to vector<8x8x64xf32>
    %18 = arith.addf %16, %17 : vector<8x8x64xf32>
    %19 = vector.shape_cast %7 : vector<1x64xf32> to vector<1x1x64xf32>
    %20 = vector.broadcast %19 : vector<1x1x64xf32> to vector<8x8x64xf32>
    %21 = arith.addf %18, %20 : vector<8x8x64xf32>
    %cst_14 = arith.constant 0.000000e+00 : f32
    %22 = vector.broadcast %cst_14 : f32 to vector<8x8x64xf32>
    %23 = arith.maximumf %21, %22 : vector<8x8x64xf32>
    %24 = vector.shape_cast %23 : vector<8x8x64xf32> to vector<64x64xf32>
    %cst_15 = arith.constant dense<0.000000e+00> : vector<64x4xf32>
    %25 = tpu.matmul %24, %9, %cst_15 {dimension_numbers = #tpu.dot_dimension_numbers<[1], [0], [0], [1], [0, 0, 1, 1], [], []>} : vector<64x64xf32>, vector<64x4xf32>, vector<64x4xf32> -> vector<64x4xf32>
    %26 = vector.broadcast %8 : vector<1x4xf32> to vector<64x4xf32>
    %27 = arith.addf %25, %26 : vector<64x4xf32>
    %28 = vector.shape_cast %27 : vector<64x4xf32> to vector<8x8x4xf32>
    %29 = vector.extract_strided_slice %28 {offsets = [0, 0, 0], sizes = [8, 8, 1], strides = [1, 1, 1]} : vector<8x8x4xf32> to vector<8x8x1xf32>
    %30 = vector.shape_cast %29 : vector<8x8x1xf32> to vector<8x8xf32>
    %31 = vector.extract_strided_slice %28 {offsets = [0, 0, 1], sizes = [8, 8, 1], strides = [1, 1, 1]} : vector<8x8x4xf32> to vector<8x8x1xf32>
    %32 = vector.shape_cast %31 : vector<8x8x1xf32> to vector<8x8xf32>
    %33 = vector.extract_strided_slice %28 {offsets = [0, 0, 2], sizes = [8, 8, 1], strides = [1, 1, 1]} : vector<8x8x4xf32> to vector<8x8x1xf32>
    %34 = vector.shape_cast %33 : vector<8x8x1xf32> to vector<8x8xf32>
    %35 = vector.extract_strided_slice %28 {offsets = [0, 0, 3], sizes = [8, 8, 1], strides = [1, 1, 1]} : vector<8x8x4xf32> to vector<8x8x1xf32>
    %36 = vector.shape_cast %35 : vector<8x8x1xf32> to vector<8x8xf32>
    %37 = tpu.concatenate %30, %32, %34, %36 in 1 : vector<8x8xf32>, vector<8x8xf32>, vector<8x8xf32>, vector<8x8xf32> -> vector<8x32xf32>
    %38 = tpu.concatenate %1, %1, %1, %1 in 1 : vector<8x8xf32>, vector<8x8xf32>, vector<8x8xf32>, vector<8x8xf32> -> vector<8x32xf32>
    %cst_16 = arith.constant 0.000000e+00 : f32
    %39 = vector.broadcast %cst_16 : f32 to vector<8x32xf32>
    %40 = arith.cmpf ogt, %38, %39 : vector<8x32xf32>
    %cst_17 = arith.constant 0.000000e+00 : f32
    %41 = vector.broadcast %cst_17 : f32 to vector<8x32xf32>
    %42 = arith.cmpf oge, %37, %41 : vector<8x32xf32>
    %cst_18 = arith.constant 0.00999999977 : f32
    %43 = vector.broadcast %cst_18 : f32 to vector<8x32xf32>
    %44 = arith.mulf %43, %37 : vector<8x32xf32>
    %45 = arith.select %42, %37, %44 : vector<8x32xi1>, vector<8x32xf32>
    %cst_19 = arith.constant -1.000000e+30 : f32
    %46 = vector.broadcast %cst_19 : f32 to vector<8x32xf32>
    %47 = arith.select %40, %45, %46 : vector<8x32xi1>, vector<8x32xf32>
    %48 = vector.extract_strided_slice %47 {offsets = [0, 0], sizes = [8, 8], strides = [1, 1]} : vector<8x32xf32> to vector<8x8xf32>
    %cst_20 = arith.constant dense<0xFF800000> : vector<8xf32>
    %49 = vector.multi_reduction <maximumf>, %48, %cst_20 [1] : vector<8x8xf32> to vector<8xf32>
    %50 = vector.shape_cast %49 : vector<8xf32> to vector<8x1xf32>
    %51 = vector.shape_cast %50 : vector<8x1xf32> to vector<8x1xf32>
    %52 = vector.broadcast %51 : vector<8x1xf32> to vector<8x8xf32>
    %53 = vector.extract_strided_slice %47 {offsets = [0, 8], sizes = [8, 8], strides = [1, 1]} : vector<8x32xf32> to vector<8x8xf32>
    %cst_21 = arith.constant dense<0xFF800000> : vector<8xf32>
    %54 = vector.multi_reduction <maximumf>, %53, %cst_21 [1] : vector<8x8xf32> to vector<8xf32>
    %55 = vector.shape_cast %54 : vector<8xf32> to vector<8x1xf32>
    %56 = vector.shape_cast %55 : vector<8x1xf32> to vector<8x1xf32>
    %57 = vector.broadcast %56 : vector<8x1xf32> to vector<8x8xf32>
    %58 = vector.extract_strided_slice %47 {offsets = [0, 16], sizes = [8, 8], strides = [1, 1]} : vector<8x32xf32> to vector<8x8xf32>
    %cst_22 = arith.constant dense<0xFF800000> : vector<8xf32>
    %59 = vector.multi_reduction <maximumf>, %58, %cst_22 [1] : vector<8x8xf32> to vector<8xf32>
    %60 = vector.shape_cast %59 : vector<8xf32> to vector<8x1xf32>
    %61 = vector.shape_cast %60 : vector<8x1xf32> to vector<8x1xf32>
    %62 = vector.broadcast %61 : vector<8x1xf32> to vector<8x8xf32>
    %63 = vector.extract_strided_slice %47 {offsets = [0, 24], sizes = [8, 8], strides = [1, 1]} : vector<8x32xf32> to vector<8x8xf32>
    %cst_23 = arith.constant dense<0xFF800000> : vector<8xf32>
    %64 = vector.multi_reduction <maximumf>, %63, %cst_23 [1] : vector<8x8xf32> to vector<8xf32>
    %65 = vector.shape_cast %64 : vector<8xf32> to vector<8x1xf32>
    %66 = vector.shape_cast %65 : vector<8x1xf32> to vector<8x1xf32>
    %67 = vector.broadcast %66 : vector<8x1xf32> to vector<8x8xf32>
    %68 = tpu.concatenate %52, %57, %62, %67 in 1 : vector<8x8xf32>, vector<8x8xf32>, vector<8x8xf32>, vector<8x8xf32> -> vector<8x32xf32>
    %69 = arith.subf %47, %68 : vector<8x32xf32>
    %70 = math.exp %69 : vector<8x32xf32>
    %71 = arith.mulf %70, %38 : vector<8x32xf32>
    %cst_24 = arith.constant dense<0.000000e+00> : vector<8x4xf32>
    %72 = tpu.matmul %71, %10, %cst_24 {dimension_numbers = #tpu.dot_dimension_numbers<[1], [0], [0], [1], [0, 0, 1, 1], [], []>} : vector<8x32xf32>, vector<32x4xf32>, vector<8x4xf32> -> vector<8x4xf32>
    %cst_25 = arith.constant 0.000000e+00 : f32
    %73 = vector.broadcast %cst_25 : f32 to vector<8x4xf32>
    %74 = arith.cmpf ogt, %72, %73 : vector<8x4xf32>
    %cst_26 = arith.constant 1.000000e+00 : f32
    %75 = vector.broadcast %cst_26 : f32 to vector<8x4xf32>
    %76 = arith.select %74, %72, %75 : vector<8x4xi1>, vector<8x4xf32>
    %77 = tpu.reciprocal %76 {approx = true} : vector<8x4xf32> -> vector<8x4xf32>
    %78 = vector.extract_strided_slice %77 {offsets = [0, 0], sizes = [8, 1], strides = [1, 1]} : vector<8x4xf32> to vector<8x1xf32>
    %79 = vector.shape_cast %78 : vector<8x1xf32> to vector<8x1xf32>
    %80 = vector.broadcast %79 : vector<8x1xf32> to vector<8x8xf32>
    %81 = vector.extract_strided_slice %77 {offsets = [0, 1], sizes = [8, 1], strides = [1, 1]} : vector<8x4xf32> to vector<8x1xf32>
    %82 = vector.shape_cast %81 : vector<8x1xf32> to vector<8x1xf32>
    %83 = vector.broadcast %82 : vector<8x1xf32> to vector<8x8xf32>
    %84 = vector.extract_strided_slice %77 {offsets = [0, 2], sizes = [8, 1], strides = [1, 1]} : vector<8x4xf32> to vector<8x1xf32>
    %85 = vector.shape_cast %84 : vector<8x1xf32> to vector<8x1xf32>
    %86 = vector.broadcast %85 : vector<8x1xf32> to vector<8x8xf32>
    %87 = vector.extract_strided_slice %77 {offsets = [0, 3], sizes = [8, 1], strides = [1, 1]} : vector<8x4xf32> to vector<8x1xf32>
    %88 = vector.shape_cast %87 : vector<8x1xf32> to vector<8x1xf32>
    %89 = vector.broadcast %88 : vector<8x1xf32> to vector<8x8xf32>
    %90 = tpu.concatenate %80, %83, %86, %89 in 1 : vector<8x8xf32>, vector<8x8xf32>, vector<8x8xf32>, vector<8x8xf32> -> vector<8x32xf32>
    %91 = arith.mulf %71, %90 : vector<8x32xf32>
    %cst_27 = arith.constant dense<0.000000e+00> : vector<8x128xf32>
    %92 = tpu.matmul %91, %5, %cst_27 {dimension_numbers = #tpu.dot_dimension_numbers<[1], [0], [0], [1], [0, 0, 1, 1], [], []>} : vector<8x32xf32>, vector<32x128xf32>, vector<8x128xf32> -> vector<8x128xf32>
    %c0_28 = arith.constant 0 : index
    %c0_29 = arith.constant 0 : index
    %c0_30 = arith.constant 0 : index
    %93 = vector.load %arg5[%c0_28, %c0_29, %c0_30] : memref<1x8x128xf32, #tpu.memory_space<vmem>>, vector<1x8x128xf32>
    %94 = vector.shape_cast %93 : vector<1x8x128xf32> to vector<8x128xf32>
    %95 = vector.shape_cast %92 : vector<8x128xf32> to vector<1x8x128xf32>
    tpu.vector_store %arg5[%c0_28, %c0_29, %c0_30], %95 {strides = array<i32>} : memref<1x8x128xf32, #tpu.memory_space<vmem>>, vector<1x8x128xf32>,
    return
  }
  func.func @transform_0(%arg0: i32) -> (i32, i32, i32) {
    %c0_i32 = arith.constant 0 : i32
    %c0_i32_0 = arith.constant 0 : i32
    %c0_i32_1 = arith.constant 0 : i32
    return %arg0, %c0_i32, %c0_i32_0 : i32, i32, i32
  }
  func.func @transform_1(%arg0: i32) -> (i32, i32, i32) {
    %c0_i32 = arith.constant 0 : i32
    %c0_i32_0 = arith.constant 0 : i32
    %c0_i32_1 = arith.constant 0 : i32
    return %arg0, %c0_i32, %c0_i32_0 : i32, i32, i32
  }
  func.func @transform_2(%arg0: i32) -> (i32, i32, i32) {
    %c0_i32 = arith.constant 0 : i32
    %c0_i32_0 = arith.constant 0 : i32
    %c0_i32_1 = arith.constant 0 : i32
    return %arg0, %c0_i32, %c0_i32_0 : i32, i32, i32
  }
  func.func @transform_3(%arg0: i32) -> (i32, i32) {
    %c0_i32 = arith.constant 0 : i32
    %c0_i32_0 = arith.constant 0 : i32
    %c0_i32_1 = arith.constant 0 : i32
    return %c0_i32, %c0_i32_0 : i32, i32
  }
  func.func @transform_4(%arg0: i32) -> (i32, i32, i32) {
    %c0_i32 = arith.constant 0 : i32
    %c0_i32_0 = arith.constant 0 : i32
    %c0_i32_1 = arith.constant 0 : i32
    return %arg0, %c0_i32, %c0_i32_0 : i32, i32, i32
  }
}

</mosaic_0001>

<bundles_post_ra>
// kernel: edge_attention.1
= control target key start
LH: loop header
LB: loop body
LE: loop exit
PB: predicated region body
PF: predicated region fallthrough
CT: control target
= control target key end

     0   :  { %s1383_s15 = smov 0   ;;  %s1664_s0 = inlined_call_operand.vmem [shape: f32[4,8,8], index: 0, kind: input, shape index: {}]   ;;  %s1665_s1 = inlined_call_operand.vmem [shape: f32[4,8,8], index: 1, kind: input, shape index: {}]   ;;  %s1666_s2 = inlined_call_operand.vmem [shape: f32[4,32,128], index: 2, kind: input, shape index: {}]   ;;  %s1667_s3 = inlined_call_operand.vmem [shape: f32[112,128], index: 3, kind: input, shape index: {}]   ;;  %s1668_s4 = inlined_call_operand.vmem [shape: f32[4,8,128], index: 4, kind: output, shape index: {}]  }
   0x1 LB: > { %s1170_s16 = sadd.s32 4294967295, %s1345_s15   ;;  %p1174_p0 = scmp.ge.s32.totalorder %s1345_s15, 1  ;;  %s1345_s15 = sphi %s1383_s15, %s14_s15  }
   0x2   : > { %p180_p1 = scmp.lt.s32.totalorder %s1345_s15, 5 }
   0x4   : > { %p181_p2 = pnand %p1174_p0, %p180_p1 }
   0x5   : > { %p213_p3 = scmp.lt.s32.totalorder (!%p181_p2), %s1170_s16, 3  ;;  %s1349_s23 = smov (!%p181_p2), 64  }
   0x6   : > { %184 = sbr.rel (%p181_p2) target bundleno = 1589 (0x635), region = 36  ;;  %s1355_s24 = smov (!%p181_p2), 16  }
   0x7   : > { %s1356_s25 = smov (!%p181_p2), 8   ;;  %s1357_s26 = smov (!%p181_p2), 24  }
   0xb   : > { %v236_v0 = vld [vmem:[%s1667_s3] sm:$0xff]  ;;  %v1347_v1 = vmov 0.0   ;;  %vm1348_vm0 = vmmov 0   ;;  %s1670_s16 = smov (!%p213_p3, %s1170_s16), 3  ;;  %vm251_vm1 = vcmask 64512   ;;  %v246_v6 = vld [vmem:[%s1667_s3 + $0x48] sm:$0xff]  ;;  %v330_v14 = vlaneseq }
   0xc   : > { %1224 = vmatprep.subr.mxu0 %v1347_v1  ;;  %1226 = vmatprep.mubr.msk.f32.mxu0 %vm1348_vm0, %v1347_v1  ;;  %s1401_s19 = sshll.u32 %s1670_s16, 3  ;;  %v1181_v5 = vld [vmem:[%s1667_s3 + $0x8] ss:$0 sm:$0xff]  ;;  %v245_v7 = vld [vmem:[%s1667_s3 + $0x40] sm:$0xff]  ;;  %v244_v8 = vld [vmem:[%s1667_s3 + $0x38] sm:$0xff]  ;;  %vm478_vm2 = vcmask 523264  }
   0xd   : > { %1225 = vmatpush3.msra.mxu0 %v236_v0  ;;  %s220_s22 = scalar_lea.vmem %s1665_s1, %s1401_s19  ;;  %1229 = vmatprep.subr.mxu1 %v246_v6  ;;  %v243_v9 = vld [vmem:[%s1667_s3 + $0x30] sm:$0xff]  ;;  %v242_v10 = vld [vmem:[%s1667_s3 + $0x28] sm:$0xff]  ;;  %v241_v11 = vld [vmem:[%s1667_s3 + $0x20] sm:$0xff]  ;;  %v1350_v12 = vmov 1966171168   ;;  %v1434_v16 = vshrl.u32 %v330_v14, 7  ;;  %s229_s14 = scalar_lea.vmem %s1668_s4, %s1401_s19 }
   0xe   : > { %1257 = vmatprep.subr.mxu0 %v1347_v1  ;;  %v231_v2 = vld [vmem:[%s220_s22] sm:$0xff]  ;;  %1230 = vmatpush3.msra.mxu1 %v246_v6  ;;  %v328_v13 = vunpack.c.l.s4 %v1350_v12  ;;  %v240_v23 = vld [vmem:[%s1667_s3 + $0x18] sm:$0xff]  ;;  %v239_v24 = vld [vmem:[%s1667_s3 + $0x10] sm:$0xff]  ;;  %vm666_vm3 = vcmask 1041409   ;;  %vm668_vm4 = vcmask 1042434   ;;  %vm670_vm5 = vcmask 1043459  }
   0xf   : > { %1227 = vmatmul.mubr.msk.f32.vlgmr.msra.gmra.mxu0 %vm251_vm1, %v231_v2  ;;  %1231 = vmatprep.subr.mxu1 %v245_v7  ;;  %v377_v26 = vsub.s32 0, %v1434_v16  ;;  %vm672_vm6 = vcmask 1044484   ;;  %vm674_vm7 = vcmask 1045509   ;;  %vm678_vm8 = vcmask 1047559   ;;  %s1195_s9 = sshll.u32 %s1670_s16, 5 }
  0x10   : > { %1265 = vmatprep.mubr.msk.f32.mxu0 %vm1348_vm0, %v1347_v1  ;;  %1232 = vmatpush3.msra.mxu1 %v245_v7  ;;  %v329_v15 = vunpack.c.0.s8 %v328_v13  ;;  %v1351_v13 = vmov 1   ;;  %vm676_vm9 = vcmask 1046534   ;;  %vm877_vm10 = vcmask 130048   ;;  %s225_s12 = scalar_lea.vmem %s1666_s2, %s1195_s9 }
  0x11   : > { %1233 = vmatprep.subr.mxu1 %v244_v8  ;;  %1299 = vset.pattern.permute.xlu0 %v1351_v13  ;;  %vm879_vm11 = vcmask 195584   ;;  %vm902_vm13 = vcmask 130112   ;;  %vm906_vm15 = vcmask 195712  }
  0x12   : > { %1234 = vmatpush3.msra.mxu1 %v244_v8  ;;  %v332_v17 = vsub.s32 %v329_v15, %v1434_v16  ;;  %v1352_v15 = vmov 0  }
  0x13   : > { %1235 = vmatprep.subr.mxu1 %v243_v9  ;;  %1298 = vset.pattern.permute.xlu1 %v1352_v15 }
  0x14   : > { %1236 = vmatpush3.msra.mxu1 %v243_v9 }
  0x15   : > { %1237 = vmatprep.subr.mxu1 %v242_v10 }
  0x16   : > { %1238 = vmatpush3.msra.mxu1 %v242_v10 }
  0x17   : > { %1239 = vmatprep.subr.mxu1 %v241_v11 }
  0x18   : > { %1240 = vmatpush3.msra.mxu1 %v241_v11 }
  0x19   : > { %1241 = vmatprep.subr.mxu1 %v240_v23 }
  0x1a   : > { %1242 = vmatpush3.msra.mxu1 %v240_v23 }
  0x1b   : > { %1243 = vmatprep.subr.mxu1 %v239_v24 }
  0x1c   : > { %1244 = vmatpush3.msra.mxu1 %v239_v24 }
  0xcf   : > { %v321_v3 = vpop.f32.mrf.mxu0 }
  0xd0   : > { %415 = vrot.lane.b32.xlu0 %v321_v3, %s1349_s23  ;;  %v333_v18 = vrot.slane %v321_v3, %v332_v17  ;;  %v326_v19 = vcombine.high %v321_v3, %v321_v3 }
  0xd1   : > { %v1228_v4 = vpop.f32.mrf.mxu0 }
  0xd2   : > { %v349_v20 = vrot.slane %v333_v18, %v332_v17  ;;  %v340_v21 = vrot.slane %v326_v19, %v332_v17  ;;  %v341_v22 = vcombine.high %v333_v18, %v333_v18 }
  0xd4   : > { %431 = vrot.lane.b32.xlu0 %v1181_v5, %s1349_s23  ;;  %v371_v25 = vcombine.high %v349_v20, %v349_v20  ;;  %v356_v27 = vrot.slane %v340_v21, %v332_v17  ;;  %v363_v28 = vrot.slane %v341_v22, %v332_v17  ;;  %v378_v30 = vrot.slane %v349_v20, %v377_v26 }
  0xd5   : > { %v342_v32 = vcombine.high %v340_v21, %v340_v21  ;;  %v1353_v20 = vmov 3   ;;  %v1354_v21 = vmov 2  }
  0xd6   : > { %v386_v31 = vrot.slane %v371_v25, %v377_v26  ;;  %v372_v33 = vcombine.high %v356_v27, %v356_v27  ;;  %v373_v34 = vcombine.high %v363_v28, %v363_v28  ;;  %v382_v37 = vrot.slane %v363_v28, %v377_v26 }
  0xd7   : > { %v394_v38 = vrot.slane %v356_v27, %v377_v26  ;;  %v370_v44 = vrot.slane %v342_v32, %v332_v17  ;;  %v1465_v17 = vld [vmem:[%s1667_s3 + $0x9] ss:$0 sm:$0xff] }
  0xd8   : > { %v390_v45 = vrot.slane %v373_v34, %v377_v26  ;;  %v402_v46 = vrot.slane %v372_v33, %v377_v26 }
  0xd9   : > { %v398_v53 = vrot.slane %v370_v44, %v377_v26  ;;  %v374_v54 = vcombine.high %v370_v44, %v370_v44 }
  0xdb   : > { %v406_v63 = vrot.slane %v374_v54, %v377_v26 }
 0x142   : > { %v416_v29 = vpop.permute.xlu0 %415 }
 0x143   : > { %v418_v35 = vadd.f32 %v416_v29, %v378_v30  ;;  %v420_v36 = vadd.f32 %v416_v29, %v386_v31  ;;  %v419_v42 = vadd.f32 %v416_v29, %v382_v37  ;;  %v422_v43 = vadd.f32 %v416_v29, %v394_v38 }
 0x144   : > { %v421_v51 = vadd.f32 %v416_v29, %v390_v45  ;;  %v424_v52 = vadd.f32 %v416_v29, %v402_v46  ;;  %v423_v59 = vadd.f32 %v416_v29, %v398_v53  ;;  %v425_v0 = vadd.f32 %v416_v29, %v406_v63 }
 0x146   : > { %v432_v39 = vpop.permute.xlu0 %431 }
 0x147   : > { %v434_v40 = vadd.f32 %v432_v39, %v418_v35  ;;  %v436_v41 = vadd.f32 %v432_v39, %v420_v36  ;;  %v435_v49 = vadd.f32 %v432_v39, %v419_v42  ;;  %v438_v50 = vadd.f32 %v432_v39, %v422_v43 }
 0x148   : > { %v437_v57 = vadd.f32 %v432_v39, %v421_v51  ;;  %v440_v58 = vadd.f32 %v432_v39, %v424_v52  ;;  %v439_v62 = vadd.f32 %v432_v39, %v423_v59  ;;  %v441_v3 = vadd.f32 %v432_v39, %v425_v0 }
 0x149   : > { %v442_v47 = vmax.f32 %v434_v40, 0.0  ;;  %v444_v48 = vmax.f32 %v436_v41, 0.0  ;;  %v443_v55 = vmax.f32 %v435_v49, 0.0  ;;  %v446_v56 = vmax.f32 %v438_v50, 0.0 }
 0x14a   : > { %v445_v60 = vmax.f32 %v437_v57, 0.0  ;;  %v448_v61 = vmax.f32 %v440_v58, 0.0  ;;  %v447_v2 = vmax.f32 %v439_v62, 0.0  ;;  %v449_v4 = vmax.f32 %v441_v3, 0.0 }
 0x14b   : > { %462 = vrot.lane.b32.xlu1 %v442_v47, %s1349_s23  ;;  %466 = vrot.lane.b32.xlu0 %v444_v48, %s1349_s23  ;;  %v633_v59 = vand.u32 127, %v330_v14 }
 0x14d   : > { %v705_v62 = vadd.s32 4294967288, %v633_v59  ;;  %v835_v63 = vadd.s32 4294967272, %v633_v59  ;;  %v1534_v3 = vsub.s32 %v633_v59, %v1434_v16 }
 0x14f   : > { %464 = vrot.lane.b32.xlu1 %v443_v55, %s1349_s23  ;;  %470 = vrot.lane.b32.xlu0 %v446_v56, %s1349_s23 }
 0x153   : > { %468 = vrot.lane.b32.xlu1 %v445_v60, %s1349_s23  ;;  %474 = vrot.lane.b32.xlu0 %v448_v61, %s1349_s23  ;;  %v770_v61 = vadd.s32 4294967280, %v633_v59 }
 0x157   : > { %472 = vrot.lane.b32.xlu1 %v447_v2, %s1349_s23 }
 0x15b   : > { %476 = vrot.lane.b32.xlu1 %v449_v4, %s1349_s23  ;;  %s216_s23 = scalar_lea.vmem %s1664_s0, %s1401_s19  ;;  %v1537_v4 = vsub.s32 %v770_v61, %v1434_v16 }
 0x15c   : > { %v1498_v35 = vld [vmem:[%s216_s23] sm:$0xff] }
 0x1bd   : > { %v463_v5 = vpop.permute.xlu1 %462  ;;  %v467_v6 = vpop.permute.xlu0 %466 }
 0x1be   : > { %1245 = vmatprep.mubr.msk.f32.mxu1 %vm478_vm2, %v463_v5  ;;  %v1540_v5 = vsub.s32 %v705_v62, %v1434_v16 }
 0x1c1   : > { %v465_v7 = vpop.permute.xlu1 %464  ;;  %v471_v8 = vpop.permute.xlu0 %470 }
 0x1c2   : > { %1246 = vmatmul.mubr.msk.f32.vlgmr.msra.gmra.mxu1 %vm478_vm2, %v465_v7 }
 0x1c3   : > { %1248 = vmatprep.mubr.msk.f32.mxu1 %vm478_vm2, %v467_v6  ;;  %v1543_v6 = vsub.s32 %v835_v63, %v1434_v16 }
 0x1c5   : > { %v469_v9 = vpop.permute.xlu1 %468  ;;  %v475_v11 = vpop.permute.xlu0 %474 }
 0x1c6   : > { %1249 = vmatmul.mubr.msk.f32.gmra.mxu1 %vm478_vm2, %v469_v9 }
 0x1c7   : > { %1251 = vmatprep.mubr.msk.f32.mxu1 %vm478_vm2, %v471_v8 }
 0x1c9   : > { %v473_v10 = vpop.permute.xlu1 %472 }
 0x1ca   : > { %1252 = vmatmul.mubr.msk.f32.gmra.mxu1 %vm478_vm2, %v473_v10 }
 0x1cb   : > { %1254 = vmatprep.mubr.msk.f32.mxu1 %vm478_vm2, %v475_v11 }
 0x1cd   : > { %v477_v12 = vpop.permute.xlu1 %476 }
 0x1ce   : > { %1255 = vmatmul.mubr.msk.f32.gmra.mxu1 %vm478_vm2, %v477_v12  ;;  %vm910_vm2 = vcmask 261312  }
 0x282   : > { %v1247_v18 = vpop.f32.mrf.mxu1 }
 0x283   : > { %v567_v19 = vadd.f32 %v1247_v18, %v1465_v17 }
 0x284   : > { %v561_v22 = vpop.f32.mrf.mxu1 }
 0x285   : > { %685 = vperm.xlu0 %1299, %v567_v19   ;;  %612 = vperm.xlu1 %1298, %v567_v19   ;;  %v562_v23 = vadd.f32 %v1465_v17, %v561_v22 }
 0x286   : > { %v1250_v24 = vpop.f32.mrf.mxu1 }
 0x287   : > { %v577_v25 = vadd.f32 %v1250_v24, %v1465_v17 }
 0x288   : > { %v571_v26 = vpop.f32.mrf.mxu1 }
 0x289   : > { %1301 = vset.pattern.permute.xlu0 %v1353_v20  ;;  %1300 = vset.pattern.permute.xlu1 %v1354_v21  ;;  %v572_v29 = vadd.f32 %v1465_v17, %v571_v26 }
 0x28a   : > { %815 = vperm.xlu0 %1301, %v567_v19   ;;  %750 = vperm.xlu1 %1300, %v567_v19   ;;  %v1253_v27 = vpop.f32.mrf.mxu1 }
 0x28b   : > { %v587_v30 = vadd.f32 %v1253_v27, %v1465_v17 }
 0x28c   : > { %v581_v28 = vpop.f32.mrf.mxu1 }
 0x28d   : > { %v582_v32 = vadd.f32 %v1465_v17, %v581_v28 }
 0x28e   : > { %1302 = vset.pattern.permute.xlu0 %v1352_v15  ;;  %1303 = vset.pattern.permute.xlu1 %v1351_v13  ;;  %v1256_v31 = vpop.f32.mrf.mxu1 }
 0x28f   : > { %609 = vperm.xlu0 %1302, %v562_v23   ;;  %682 = vperm.xlu1 %1303, %v562_v23   ;;  %v597_v36 = vadd.f32 %v1256_v31, %v1465_v17 }
 0x290   : > { %v591_v33 = vpop.f32.mrf.mxu1 }
 0x291   : > { %v592_v34 = vadd.f32 %v1465_v17, %v591_v33 }
 0x293   : > { %1304 = vset.pattern.permute.xlu0 %v1354_v21  ;;  %1305 = vset.pattern.permute.xlu1 %v1353_v20 }
 0x294   : > { %747 = vperm.xlu0 %1304, %v562_v23   ;;  %812 = vperm.xlu1 %1305, %v562_v23  }
 0x298   : > { %1307 = vset.pattern.permute.xlu0 %v1351_v13  ;;  %1306 = vset.pattern.permute.xlu1 %v1352_v15 }
 0x299   : > { %691 = vperm.xlu0 %1307, %v577_v25   ;;  %618 = vperm.xlu1 %1306, %v577_v25  }
 0x29d   : > { %1308 = vset.pattern.permute.xlu0 %v1354_v21  ;;  %1309 = vset.pattern.permute.xlu1 %v1353_v20 }
 0x29e   : > { %756 = vperm.xlu0 %1308, %v577_v25   ;;  %821 = vperm.xlu1 %1309, %v577_v25  }
 0x2a2   : > { %1315 = vset.pattern.permute.xlu0 %v1351_v13  ;;  %1310 = vset.pattern.permute.xlu1 %v1352_v15 }
 0x2a3   : > { %697 = vperm.xlu0 %1315, %v587_v30   ;;  %615 = vperm.xlu1 %1310, %v572_v29  }
 0x2a7   : > { %1321 = vset.pattern.permute.xlu0 %v1353_v20  ;;  %1311 = vset.pattern.permute.xlu1 %v1351_v13 }
 0x2a8   : > { %824 = vperm.xlu0 %1321, %v582_v32   ;;  %688 = vperm.xlu1 %1311, %v572_v29  }
 0x2ac   : > { %1325 = vset.pattern.permute.xlu0 %v1352_v15  ;;  %1312 = vset.pattern.permute.xlu1 %v1354_v21 }
 0x2ad   : > { %753 = vperm.xlu1 %1312, %v572_v29   ;;  %627 = vperm.xlu0 %1325, %v592_v34  }
 0x2b1   : > { %1313 = vset.pattern.permute.xlu1 %v1353_v20  ;;  %1327 = vset.pattern.permute.xlu0 %v1354_v21 }
 0x2b2   : > { %818 = vperm.xlu1 %1313, %v572_v29   ;;  %765 = vperm.xlu0 %1327, %v592_v34  }
 0x2b6   : > { %1314 = vset.pattern.permute.xlu1 %v1352_v15  ;;  %1328 = vset.pattern.permute.xlu0 %v1353_v20 }
 0x2b7   : > { %624 = vperm.xlu1 %1314, %v587_v30   ;;  %830 = vperm.xlu0 %1328, %v592_v34  }
 0x2bb   : > { %1316 = vset.pattern.permute.xlu1 %v1354_v21  ;;  %885 = vrot.lane.b32.xlu0 %v1498_v35, %s1355_s24 }
 0x2bc   : > { %762 = vperm.xlu1 %1316, %v587_v30   ;;  %1331 = vset.pattern.permute.xlu0 %v1351_v13 }
 0x2c0   : > { %1317 = vset.pattern.permute.xlu1 %v1353_v20 }
 0x2c1   : > { %827 = vperm.xlu1 %1317, %v587_v30  }
 0x2c5   : > { %1318 = vset.pattern.permute.xlu1 %v1352_v15 }
 0x2c6   : > { %621 = vperm.xlu1 %1318, %v582_v32  }
 0x2ca   : > { %1319 = vset.pattern.permute.xlu1 %v1351_v13 }
 0x2cb   : > { %694 = vperm.xlu1 %1319, %v582_v32  }
 0x2cf   : > { %1320 = vset.pattern.permute.xlu1 %v1354_v21 }
 0x2d0   : > { %759 = vperm.xlu1 %1320, %v582_v32  }
 0x2d4   : > { %1322 = vset.pattern.permute.xlu1 %v1352_v15 }
 0x2d5   : > { %630 = vperm.xlu1 %1322, %v597_v36  }
 0x2d9   : > { %1323 = vset.pattern.permute.xlu1 %v1351_v13 }
 0x2da   : > { %703 = vperm.xlu1 %1323, %v597_v36  }
 0x2de   : > { %1324 = vset.pattern.permute.xlu1 %v1354_v21 }
 0x2df   : > { %768 = vperm.xlu1 %1324, %v597_v36  }
 0x2e3   : > { %1326 = vset.pattern.permute.xlu1 %v1351_v13 }
 0x2e4   : > { %700 = vperm.xlu1 %1326, %v592_v34  }
 0x2e8   : > { %1329 = vset.pattern.permute.xlu1 %v1353_v20 }
 0x2e9   : > { %833 = vperm.xlu1 %1329, %v597_v36  }
 0x2ed   : > { %882 = vrot.lane.b32.xlu1 %v1498_v35, %s1356_s25 }
 0x2ee   : > { %1330 = vset.pattern.permute.xlu1 %v1352_v15 }
 0x2f1   : > { %888 = vrot.lane.b32.xlu1 %v1498_v35, %s1357_s26 }
 0x300   : > { %v613_v37 = vpop.permute.xlu1 %612  ;;  %v686_v45 = vpop.permute.xlu0 %685 }
 0x301   : > { %v641_v9 = vrot.slane %v613_v37, %v1534_v3  ;;  %v713_v17 = vrot.slane %v686_v45, %v1540_v5 }
 0x305   : > { %v751_v38 = vpop.permute.xlu1 %750  ;;  %v816_v47 = vpop.permute.xlu0 %815 }
 0x306   : > { %v778_v15 = vrot.slane %v751_v38, %v1537_v4  ;;  %v843_v18 = vrot.slane %v816_v47, %v1543_v6 }
 0x30a   : > { %v683_v39 = vpop.permute.xlu1 %682  ;;  %v610_v49 = vpop.permute.xlu0 %609 }
 0x30b   : > { %v637_v14 = vrot.slane %v610_v49, %v1534_v3  ;;  %v709_v10 = vrot.slane %v683_v39, %v1540_v5 }
 0x30d   : > { %v667_v19 = vsel %vm666_vm3, %v641_v9, %v637_v14  ;;  %v738_v27 = vsel %vm666_vm3, %v713_v17, %v709_v10 }
 0x30f   : > { %v813_v40 = vpop.permute.xlu1 %812  ;;  %v748_v51 = vpop.permute.xlu0 %747 }
 0x310   : > { %v774_v7 = vrot.slane %v748_v51, %v1537_v4  ;;  %v839_v22 = vrot.slane %v813_v40, %v1543_v6 }
 0x312   : > { %v803_v23 = vsel %vm666_vm3, %v778_v15, %v774_v7  ;;  %v868_v36 = vsel %vm666_vm3, %v843_v18, %v839_v22  ;;  %vm921_vm3 = vcmask 261120  }
 0x314   : > { %v1516_v41 = vpop.permute.xlu1 %618  ;;  %v692_v54 = vpop.permute.xlu0 %691 }
 0x315   : > { %v649_v28 = vrot.slane %v1516_v41, %v1534_v3  ;;  %v721_v37 = vrot.slane %v692_v54, %v1540_v5 }
 0x319   : > { %v1518_v42 = vpop.permute.xlu1 %821  ;;  %v757_v56 = vpop.permute.xlu0 %756 }
 0x31a   : > { %v786_v31 = vrot.slane %v757_v56, %v1537_v4 }
 0x31e   : > { %v616_v43 = vpop.permute.xlu1 %615  ;;  %v1526_v58 = vpop.permute.xlu0 %697 }
 0x31f   : > { %v645_v8 = vrot.slane %v616_v43, %v1534_v3 }
 0x321   : > { %v669_v24 = vsel %vm668_vm4, %v645_v8, %v667_v19 }
 0x322   : > { %v671_v39 = vsel %vm670_vm5, %v649_v28, %v669_v24 }
 0x323   : > { %v689_v44 = vpop.permute.xlu1 %688  ;;  %v1529_v0 = vpop.permute.xlu0 %824 }
 0x324   : > { %v717_v16 = vrot.slane %v689_v44, %v1540_v5  ;;  %v851_v44 = vrot.slane %v1518_v42, %v1543_v6  ;;  %v855_v49 = vrot.slane %v1529_v0, %v1543_v6 }
 0x326   : > { %v739_v32 = vsel %vm668_vm4, %v717_v16, %v738_v27 }
 0x328   : > { %v754_v46 = vpop.permute.xlu1 %753  ;;  %v628_v11 = vpop.permute.xlu0 %627 }
 0x329   : > { %v782_v12 = vrot.slane %v754_v46, %v1537_v4  ;;  %v740_v46 = vsel %vm670_vm5, %v721_v37, %v739_v32  ;;  %v249_v32 = vld [vmem:[%s1667_s3 + $0x60] sm:$0xff] }
 0x32b   : > { %v804_v29 = vsel %vm668_vm4, %v782_v12, %v803_v23 }
 0x32c   : > { %v805_v43 = vsel %vm670_vm5, %v786_v31, %v804_v29  ;;  %v250_v31 = vld [vmem:[%s1667_s3 + $0x68] sm:$0xff] }
 0x32d   : > { %v819_v48 = vpop.permute.xlu1 %818  ;;  %v766_v38 = vpop.permute.xlu0 %765  ;;  %1258 = vmatpush3.msra.mxu0 %v250_v31 }
 0x32e   : > { %v847_v25 = vrot.slane %v819_v48, %v1543_v6  ;;  %v729_v48 = vrot.slane %v1526_v58, %v1540_v5  ;;  %v661_v58 = vrot.slane %v628_v11, %v1534_v3  ;;  %v798_v61 = vrot.slane %v766_v38, %v1537_v4  ;;  %1259 = vmatprep.subr.mxu0 %v1347_v1 }
 0x32f   : > { %1260 = vmatpush3.msra.mxu0 %v249_v32 }
 0x330   : > { %v869_v40 = vsel %vm668_vm4, %v847_v25, %v868_v36  ;;  %1261 = vmatprep.subr.mxu0 %v1347_v1 }
 0x331   : > { %v870_v42 = vsel %vm670_vm5, %v851_v44, %v869_v40 }
 0x332   : > { %v1520_v50 = vpop.permute.xlu1 %624  ;;  %v831_v62 = vpop.permute.xlu0 %830  ;;  %v871_v0 = vsel %vm672_vm6, %v855_v49, %v870_v42  ;;  %v235_v42 = vld [vmem:[%s225_s12 + $0x18] sm:$0xff] }
 0x333   : > { %v657_v45 = vrot.slane %v1520_v50, %v1534_v3  ;;  %v863_v9 = vrot.slane %v831_v62, %v1543_v6 }
 0x336   : > { %v886_v22 = vpop.permute.xlu0 %885 }
 0x337   : > { %v1522_v52 = vpop.permute.xlu1 %762 }
 0x338   : > { %v794_v51 = vrot.slane %v1522_v52, %v1537_v4 }
 0x33c   : > { %v1524_v53 = vpop.permute.xlu1 %827 }
 0x33d   : > { %v859_v50 = vrot.slane %v1524_v53, %v1543_v6 }
 0x33f   : > { %v872_v14 = vsel %vm674_vm7, %v859_v50, %v871_v0  ;;  %v234_v50 = vld [vmem:[%s225_s12 + $0x10] sm:$0xff] }
 0x340   : > { %v873_v15 = vsel %vm676_vm9, %v863_v9, %v872_v14 }
 0x341   : > { %v622_v55 = vpop.permute.xlu1 %621 }
 0x342   : > { %v653_v26 = vrot.slane %v622_v55, %v1534_v3 }
 0x344   : > { %v673_v41 = vsel %vm672_vm6, %v653_v26, %v671_v39 }
 0x345   : > { %v675_v55 = vsel %vm674_vm7, %v657_v45, %v673_v41 }
 0x346   : > { %v695_v57 = vpop.permute.xlu1 %694 }
 0x347   : > { %v725_v33 = vrot.slane %v695_v57, %v1540_v5 }
 0x349   : > { %v741_v54 = vsel %vm672_vm6, %v725_v33, %v740_v46  ;;  %v248_v33 = vld [vmem:[%s1667_s3 + $0x58] sm:$0xff] }
 0x34a   : > { %v742_v63 = vsel %vm674_vm7, %v729_v48, %v741_v54  ;;  %1262 = vmatpush3.msra.mxu0 %v248_v33 }
 0x34b   : > { %v760_v60 = vpop.permute.xlu1 %759  ;;  %1263 = vmatprep.subr.mxu0 %v1347_v1 }
 0x34c   : > { %v790_v30 = vrot.slane %v760_v60, %v1537_v4 }
 0x34e   : > { %v806_v47 = vsel %vm672_vm6, %v790_v30, %v805_v43 }
 0x34f   : > { %v807_v59 = vsel %vm674_vm7, %v794_v51, %v806_v47 }
 0x350   : > { %v1531_v2 = vpop.permute.xlu1 %630  ;;  %v808_v8 = vsel %vm676_vm9, %v798_v61, %v807_v59 }
 0x351   : > { %v665_v56 = vrot.slane %v1531_v2, %v1534_v3  ;;  %v677_v2 = vsel %vm676_vm9, %v661_v58, %v675_v55  ;;  %v233_v55 = vld [vmem:[%s225_s12 + $0x8] sm:$0xff] }
 0x353   : > { %v679_v7 = vsel %vm678_vm8, %v665_v56, %v677_v2  ;;  %v232_v56 = vld [vmem:[%s225_s12] sm:$0xff] }
 0x355   : > { %v704_v13 = vpop.permute.xlu1 %703 }
 0x356   : > { %v737_v53 = vrot.slane %v704_v13, %v1540_v5 }
 0x35a   : > { %v769_v34 = vpop.permute.xlu1 %768 }
 0x35b   : > { %v802_v60 = vrot.slane %v769_v34, %v1537_v4  ;;  %v247_v34 = vld [vmem:[%s1667_s3 + $0x50] sm:$0xff] }
 0x35c   : > { %1264 = vmatpush3.msra.mxu0 %v247_v34 }
 0x35d   : > { %1268 = vmatprep.subr.mxu0 %v1347_v1 }
 0x35f   : > { %v701_v57 = vpop.permute.xlu1 %700 }
 0x360   : > { %v733_v52 = vrot.slane %v701_v57, %v1540_v5  ;;  %v809_v5 = vsel %vm678_vm8, %v802_v60, %v808_v8 }
 0x362   : > { %v743_v3 = vsel %vm676_vm9, %v733_v52, %v742_v63 }
 0x363   : > { %v744_v4 = vsel %vm678_vm8, %v737_v53, %v743_v3 }
 0x364   : > { %v876_v10 = vsel %vm251_vm1, %v679_v7, %v744_v4  ;;  %v834_v11 = vpop.permute.xlu1 %833 }
 0x365   : > { %v867_v12 = vrot.slane %v834_v11, %v1543_v6  ;;  %v878_v13 = vsel %vm877_vm10, %v876_v10, %v809_v5 }
 0x367   : > { %v874_v16 = vsel %vm678_vm8, %v867_v12, %v873_v15 }
 0x368   : > { %v883_v17 = vpop.permute.xlu1 %882  ;;  %v880_v18 = vsel %vm879_vm11, %v878_v13, %v874_v16 }
 0x369   : > { %v891_v19 = vsel %vm251_vm1, %v1498_v35, %v883_v17  ;;  %v896_v23 = vmul.f32 0.01, %v880_v18  ;;  %vm895_vm12 = vcmp.ge.f32.partialorder %v880_v18, 0.0 }
 0x36a   : > { %v892_v24 = vsel %vm877_vm10, %v891_v19, %v886_v22 }
 0x36b   : > { %v897_v26 = vsel %vm895_vm12, %v880_v18, %v896_v23 }
 0x36c   : > { %v889_v25 = vpop.permute.xlu1 %888 }
 0x36d   : > { %v893_v6 = vsel %vm879_vm11, %v892_v24, %v889_v25 }
 0x36e   : > { %vm894_vm14 = vcmp.gt.f32.partialorder %v893_v6, 0.0 }
 0x36f   : > { %v898_v27 = vsel %vm894_vm14, %v897_v26, -1e+30 }
 0x370   : > { %v903_v28 = vsel %vm902_vm13, %v898_v27, -inf  ;;  %v899_v29 = vsel %vm251_vm1, %v898_v27, -inf  ;;  %v907_v30 = vsel %vm906_vm15, %v898_v27, -inf  ;;  %v911_v35 = vsel %vm910_vm2, %v898_v27, -inf }
 0x371   : > { %904 = vmax.xlane.f32.xlu1 %v903_v28  ;;  %900 = vmax.xlane.f32.xlu0 %v899_v29 }
 0x375   : > { %908 = vmax.xlane.f32.xlu0 %v907_v30 }
 0x379   : > { %912 = vmax.xlane.f32.xlu0 %v911_v35 }
 0x3fa   : > { %v901_v36 = vpop.xlane.xlu0 %900  ;;  %v905_v37 = vpop.xlane.xlu1 %904 }
 0x3fb   : > { %v914_v39 = vsel %vm251_vm1, %v901_v36, %v905_v37 }
 0x3fe   : > { %v909_v38 = vpop.xlane.xlu0 %908 }
 0x3ff   : > { %v915_v40 = vsel %vm877_vm10, %v914_v39, %v909_v38 }
 0x402   : > { %v913_v41 = vpop.xlane.xlu0 %912 }
 0x403   : > { %v916_v43 = vsel %vm879_vm11, %v915_v40, %v913_v41 }
 0x404   : > { %v917_v44 = vsub.f32 %v898_v27, %v916_v43 }
 0x406   : > { %v918_v45 = vmul.f32 1.442695, %v917_v44 }
 0x408   : > { %1335 = vpow2.f32 %v918_v45 }
 0x415   : > { %v1336_v46 = vpop.eup %1335 }
 0x416   : > { %v920_v47 = vmul.f32 %v1336_v46, %v893_v6 }
 0x418   : > { %1266 = vmatmul.mubr.msk.f32.vlgmr.msra.gmra.mxu0 %vm921_vm3, %v920_v47 }
 0x419   : > { %1276 = vmatprep.mubr.msk.f32.mxu0 %vm1348_vm0, %v1347_v1  ;;  %1269 = vmatpush3.msra.mxu0 %v235_v42 }
 0x41a   : > { %1270 = vmatprep.subr.mxu0 %v1347_v1 }
 0x41b   : > { %1271 = vmatpush3.msra.mxu0 %v234_v50 }
 0x41c   : > { %1272 = vmatprep.subr.mxu0 %v1347_v1 }
 0x41d   : > { %1273 = vmatpush3.msra.mxu0 %v233_v55 }
 0x41e   : > { %1274 = vmatprep.subr.mxu0 %v1347_v1 }
 0x41f   : > { %1275 = vmatpush3.msra.mxu0 %v232_v56 }
 0x4d8   : > { %v991_v48 = vpop.f32.mrf.mxu0 }
 0x4d9   : > { %vm995_vm4 = vcmp.gt.f32.partialorder %v991_v48, 0.0 }
 0x4da   : > { %v996_v49 = vsel %vm995_vm4, %v991_v48, 1.0  ;;  %v1267_v51 = vpop.f32.mrf.mxu0 }
 0x4db   : > { %1337 = vrcp.f32 %v996_v49 }
 0x4e8   : > { %v1338_v54 = vpop.eup %1337 }
 0x4e9   : > { %1004 = vperm.xlu0 %1331, %v1338_v54   ;;  %1000 = vperm.xlu1 %1330, %v1338_v54  }
 0x4ed   : > { %1332 = vset.pattern.permute.xlu1 %v1354_v21  ;;  %1334 = vset.pattern.permute.xlu0 %v1353_v20 }
 0x4ee   : > { %1008 = vperm.xlu1 %1332, %v1338_v54  }
 0x4f2   : > { %1333 = vset.pattern.permute.xlu1 %v1353_v20 }
 0x4f3   : > { %1012 = vperm.xlu1 %1333, %v1338_v54  }
 0x564   : > { %v1001_v57 = vpop.permute.xlu1 %1000  ;;  %v1005_v58 = vpop.permute.xlu0 %1004 }
 0x565   : > { %v1015_v59 = vsel %vm251_vm1, %v1001_v57, %v1005_v58 }
 0x569   : > { %v1009_v21 = vpop.permute.xlu1 %1008 }
 0x56a   : > { %v1016_v60 = vsel %vm877_vm10, %v1015_v59, %v1009_v21 }
 0x56e   : > { %v1013_v52 = vpop.permute.xlu1 %1012 }
 0x56f   : > { %v1017_v61 = vsel %vm879_vm11, %v1016_v60, %v1013_v52 }
 0x570   : > { %v1018_v62 = vmul.f32 %v1017_v61, %v920_v47 }
 0x572   : > { %1277 = vmatmul.mubr.msk.f32.vlgmr.msra.gmra.mxu0 %vm921_vm3, %v1018_v62 }
 0x632   : > { %v1088_v1 = vpop.f32.mrf.mxu0 }
 0x633   : > { %1092 = vst [vmem:[%s229_s14] sm:$0xff] %v1088_v1 }
 0x634   : > { %v1278_v20 = vpop.f32.mrf.mxu0 }
 0x635 PF: > { %s14_s15 = sadd.s32 1, %s1345_s15  }
 0x636   : > { %p11_p4 = scmp.ge.s32.totalorder %s14_s15, 6  }
 0x638   :  { %13 = sbr.rel (!%p11_p4) target bundleno = 1 (0x1), region = 72 }

</bundles_post_ra>
